<compile_context>
chip_gen: v6e
topology: v6e:2x2x1
jax: 0.10.0
libtpu: 0.0.40
codegen_flags: <defaults>
</compile_context>

<pallas_src>
import jax
import jax.numpy as jnp
from jax.experimental import pallas as pl
from jax.experimental.pallas import tpu as pltpu

LANES = 128            # vreg lane width (fast axis)
SUBLANES = 8           # f32 sublane depth
MAX_ROW_BLOCK = 2048   # 2048 * 128 * 4 B = 1 MiB per block (safe on v5e/v6e/v7x)
MIN_PALLAS_BATCH = 8192  # below this, plain XLA beats the custom-call overhead


def linear_fma_kernel(wb_ref, x_ref, o_ref):
    # wb_ref: (2,) f32 in SMEM -> [weight, bias] scalars.
    # x_ref / o_ref: (row_block, 128) f32 lane-dense VMEM tiles.
    w = wb_ref[0]
    b = wb_ref[1]
    o_ref[...] = x_ref[...] * w + b   # one VPU FMA per vreg, f32 end-to-end


def _pick_row_block(rows):
    """Pick a (row_block, n_blocks) pair: blocks are multiples of 8 rows and,
    for multi-block grids, the grid length is even so v7x's two TensorCores
    get balanced work (no-op on single-TC v5e/v6e)."""
    if rows <= MAX_ROW_BLOCK:
        return rows, 1                       # single block == full array dims
    n_blocks = pl.cdiv(rows, MAX_ROW_BLOCK)
    if n_blocks % 2 == 1:
        n_blocks += 1                        # even step count for 2-TC split
    row_block = pl.cdiv(rows, n_blocks)
    row_block = pl.cdiv(row_block, SUBLANES) * SUBLANES   # keep (8,128) tiling
    return row_block, pl.cdiv(rows, row_block)


def linear_forward(x, w, b, *, min_pallas_batch=MIN_PALLAS_BATCH):
    """x: (N, 1) f32, w: (1, 1) f32, b: (1,) f32 -> (N, 1) f32 (== x @ w + b)."""
    N, D_in = x.shape
    D_out = w.shape[1]
    assert D_in == 1 and D_out == 1, "kernel specialized for nn.Linear(1, 1)"

    # Small-batch fast path: a single fused XLA elementwise op; the Pallas
    # launch + layout plumbing dominates at this size.
    if N < min_pallas_batch:
        return x * w.reshape(1, 1) + b.reshape(1, 1)

    # Lane-dense layout: pad only to a multiple of 128 elements (<=508 B) and
    # skip the pad / final slice entirely when already aligned.
    n_pad = pl.cdiv(N, LANES) * LANES
    flat = x.reshape(-1)
    if n_pad != N:
        flat = jnp.pad(flat, (0, n_pad - N))
    rows = n_pad // LANES
    x_dense = flat.reshape(rows, LANES)

    # Scalar weight + bias packed into a tiny SMEM array (no padded VMEM tiles).
    wb = jnp.concatenate([w.reshape(-1), b.reshape(-1)]).astype(jnp.float32)

    row_block, n_blocks = _pick_row_block(rows)

    out_dense = pl.pallas_call(
        linear_fma_kernel,
        out_shape=jax.ShapeDtypeStruct((rows, LANES), jnp.float32),
        grid=(n_blocks,),
        in_specs=[
            pl.BlockSpec(memory_space=pltpu.MemorySpace.SMEM),    # [w, b] scalars
            pl.BlockSpec((row_block, LANES), lambda i: (i, 0)),   # x row block
        ],
        out_specs=pl.BlockSpec((row_block, LANES), lambda i: (i, 0)),
        compiler_params=pltpu.CompilerParams(
            dimension_semantics=("parallel",)),
        cost_estimate=pl.CostEstimate(
            flops=2 * rows * LANES,
            transcendentals=0,
            # Actual lane-dense DMA traffic (read + write) plus the 8 B of wb.
            bytes_accessed=2 * rows * LANES * 4 + 8),
    )(wb, x_dense)

    out_flat = out_dense.reshape(-1)
    if n_pad != N:
        out_flat = out_flat[:N]
    return out_flat.reshape(N, D_out)


if __name__ == "__main__":
    # Shapes implied by the module: input_dim = 1, output_dim = 1, batch = 256.
    N, D_in, D_out = 256, 1, 1

    key = jax.random.PRNGKey(0)
    kx, kw, kb = jax.random.split(key, 3)

    # Input data (analogous to x_train: (256, 1) float32 in [0, 1)).
    x = jax.random.uniform(kx, (N, D_in), dtype=jnp.float32)

    # Deterministic nn.Linear-style init: U(-1/sqrt(in), 1/sqrt(in)).
    bound = 1.0 / jnp.sqrt(jnp.float32(D_in))
    w = jax.random.uniform(kw, (D_in, D_out), dtype=jnp.float32,
                           minval=-bound, maxval=bound)
    b = jax.random.uniform(kb, (D_out,), dtype=jnp.float32,
                           minval=-bound, maxval=bound)

    ref = x @ w + b[None, :]

    # Force the Pallas path (the auto fast path would bypass the kernel at N=256).
    out = linear_forward(x, w, b, min_pallas_batch=0)
    jax.block_until_ready(out)
    assert out.shape == (N, D_out)
    assert jnp.allclose(out, ref, atol=1e-5, rtol=1e-5)

    # Also sanity-check the small-batch XLA fast path (default threshold).
    out_fast = linear_forward(x, w, b)
    jax.block_until_ready(out_fast)
    assert jnp.allclose(out_fast, ref, atol=1e-5, rtol=1e-5)

    print("KERNEL_OK")
</pallas_src>

<mosaic_0001>
module attributes {stable_mosaic.version = 11 : i64} {
  func.func @linear_fma_kernel(%arg0: i32, %arg1: memref<2xf32, #tpu.memory_space<smem>>, %arg2: memref<2x128xf32, #tpu.memory_space<vmem>>, %arg3: memref<2x128xf32, #tpu.memory_space<vmem>>) attributes {dimension_semantics = [#tpu.dimension_semantics<parallel>], iteration_bounds = array<i64: 1>, scalar_prefetch = 0 : i64, scratch_operands = 0 : i64, tpu.core_type = #tpu.core_type<tc>, window_params = [{transform_indices = @transform_0, window_bounds = array<i64: 2>}, {transform_indices = @transform_1, window_bounds = array<i64: 2, 128>}, {transform_indices = @transform_2, window_bounds = array<i64: 2, 128>}]} {
    %c0 = arith.constant 0 : index
    %0 = memref.load %arg1[%c0] : memref<2xf32, #tpu.memory_space<smem>>
    %c1 = arith.constant 1 : index
    %1 = memref.load %arg1[%c1] : memref<2xf32, #tpu.memory_space<smem>>
    %c0_0 = arith.constant 0 : index
    %c0_1 = arith.constant 0 : index
    %2 = vector.load %arg2[%c0_0, %c0_1] : memref<2x128xf32, #tpu.memory_space<vmem>>, vector<2x128xf32>
    %3 = vector.broadcast %0 : f32 to vector<2x128xf32>
    %4 = arith.mulf %2, %3 : vector<2x128xf32>
    %5 = vector.broadcast %1 : f32 to vector<2x128xf32>
    %6 = arith.addf %4, %5 : vector<2x128xf32>
    %c0_2 = arith.constant 0 : index
    %c0_3 = arith.constant 0 : index
    %7 = vector.load %arg3[%c0_2, %c0_3] : memref<2x128xf32, #tpu.memory_space<vmem>>, vector<2x128xf32>
    tpu.vector_store %arg3[%c0_2, %c0_3], %6 {strides = array<i32>} : memref<2x128xf32, #tpu.memory_space<vmem>>, vector<2x128xf32>,
    return
  }
  func.func @transform_0(%arg0: i32) -> i32 {
    %c0_i32 = arith.constant 0 : i32
    %c0_i32_0 = arith.constant 0 : i32
    return %c0_i32 : i32
  }
  func.func @transform_1(%arg0: i32) -> (i32, i32) {
    %c0_i32 = arith.constant 0 : i32
    %c0_i32_0 = arith.constant 0 : i32
    return %arg0, %c0_i32 : i32, i32
  }
  func.func @transform_2(%arg0: i32) -> (i32, i32) {
    %c0_i32 = arith.constant 0 : i32
    %c0_i32_0 = arith.constant 0 : i32
    return %arg0, %c0_i32 : i32, i32
  }
}

</mosaic_0001>

<bundles_post_ra>
// kernel: tpu_custom_call.1
= control target key start
LH: loop header
LB: loop body
LE: loop exit
PB: predicated region body
PF: predicated region fallthrough
CT: control target
= control target key end

     0   :  { %7 = vsyncpa [#allocation5], 0  ;;  %s144_s0 = inlined_call_operand.hbm [shape: f32[2], index: 0, kind: input, shape index: {}]   ;;  %s145_s1 = inlined_call_operand.hbm [shape: f32[2,128], index: 1, kind: input, shape index: {}]   ;;  %s146_s2 = inlined_call_operand.hbm [shape: f32[2,128], index: 2, kind: output, shape index: {}]  }
   0x1   :  { %8 = vsyncpa [#allocation3], 0 }
   0x2   :  { %9 = vsyncpa [#allocation4], 0  ;;  %s117_s9 = smov [#allocation2]   ;;  %s118_s12 = smov [#allocation6]  }
   0x3   :  { %17 = dma.hbm_to_smem %s144_s0, 16, %s117_s9, [#allocation5]  }
   0x4   :  { %s24_s13 = sshll.u32 %s118_s12, 4  ;;  %s25_s13 = int_to_ptr.vmem [resolvable:$true] %s24_s13 }
   0x5   :  { %s79_s14 = scalar_lea.vmem %s25_s13, 32  ;;  %p84_p1 = scmp.lt.s32.totalorder %s25_s13, %s25_s13 }
   0x6   :  { %p80_p0 = scmp.ne.s32.totalorder %s25_s13, %s79_s14  ;;  %p85_p2 = scmp.lt.s32.totalorder %s79_s14, %s79_s14 }
   0x8   :  { %p86_p3 = por %p85_p2, %p84_p1 }
   0xa   :  { %p87_p4 = pnand %p86_p3, %p80_p0 }
   0xc   :  { %90 = shalt.err (!%p87_p4)
}
   0xd   :  { %27 = dma.hbm_to_vmem [thread:$0]  %s145_s1, 32, %s25_s13, [#allocation3]  }
   0xe   :  { %111 = dma.done.wait [#allocation5], 16  }
   0xf   :  { %112 = vsyncadd [#allocation5], 4294967280 }
  0x10   :  { %113 = dma.done.wait [#allocation3], 32  }
  0x11   :  { %114 = vsyncadd [#allocation3], 4294967264 }
  0x12   :  { %34 = sfence }
  0x13   :  { %s35_s0 = sld [smem:[#allocation2]]  ;;  %v37_v0 = vld [vmem:[#allocation6] sm:$0x3]  ;;  %s119_s18 = smov [#allocation7]  }
  0x14   :  { %s59_s17 = sld [smem:[#allocation2 + $0x1]]  ;;  %s49_s19 = sshll.u32 %s119_s18, 4  ;;  %s50_s19 = int_to_ptr.vmem [resolvable:$true] %s49_s19 }
  0x15   :  { %s91_s20 = scalar_lea.vmem %s50_s19, 32  ;;  %p96_p6 = scmp.lt.s32.totalorder %s50_s19, %s50_s19 }
  0x16   :  { %p92_p5 = scmp.ne.s32.totalorder %s50_s19, %s91_s20  ;;  %p97_p7 = scmp.lt.s32.totalorder %s91_s20, %s91_s20 }
  0x18   :  { %p98_p8 = por %p97_p7, %p96_p6 }
  0x19   :  { %v38_v1 = vstv %s35_s0 }
  0x1a   :  { %v39_v2 = vmul.f32 %v38_v1, %v37_v0  ;;  %v40_v3 = vstv %s59_s17  ;;  %p99_p9 = pnand %p98_p8, %p92_p5 }
  0x1c   :  { %v41_v4 = vadd.f32 %v40_v3, %v39_v2 }
  0x1e   :  { %42 = vst [vmem:[#allocation7] sm:$0x3] %v41_v4 }
  0x1f   :  { %102 = shalt.err (!%p99_p9)
}
  0x20   :  { %52 = dma.vmem_to_hbm [thread:$0]  %s50_s19, 32, %s146_s2, [#allocation4]  }
  0x21   :  { %115 = dma.done.wait [#allocation4], 32  }
  0x22   :  { %116 = vsyncadd [#allocation4], 4294967264 }
  0x23   :  { %56 = vsyncpa [#allocation3], 1 }
  0x24   :  { %57 = vsyncpa [#allocation4], 1 }
  0x25   :  { %58 = vsyncpa [#allocation5], 1 }

</bundles_post_ra>
